<compile_context>
chip_gen: v5e
topology: v5e:2x2
jax: 0.10.0
libtpu: 0.0.40
codegen_flags: <defaults>
</compile_context>

<pallas_src>
import jax
import jax.numpy as jnp
from jax.experimental import pallas as pl
from jax.experimental.pallas import tpu as pltpu

LN_EPS = 1e-5


def _round_up(n, m):
    return ((n + m - 1) // m) * m


def residual_ffn_kernel(x_ref, w1_ref, b1_ref, w2_ref, b2_ref,
                        gamma_ref, beta_ref, o_ref, acc_ref):
    """Fused y = LayerNorm(x + FFN(x)) for one (tm, D) row tile.

    Grid = (row_tiles, ff_tiles); the FF axis is a reduction for the second
    matmul, accumulated into an f32 VMEM scratch. Residual + LayerNorm run
    only on the last FF step.
    """
    kf = pl.program_id(1)

    @pl.when(kf == 0)
    def _init():
        acc_ref[...] = jnp.zeros_like(acc_ref)

    x = x_ref[...]                                   # (tm, D), input dtype
    x_bf = x.astype(jnp.bfloat16)                    # MXU LHS (bf16 rate)

    # ---- sublayer (FF block): Linear -> ReLU -> Linear ----
    h = jnp.dot(x_bf, w1_ref[...], preferred_element_type=jnp.float32)
    h = h + b1_ref[...]                              # (tm, tf), f32
    h = jnp.maximum(h, 0.0)
    acc_ref[...] += jnp.dot(h.astype(jnp.bfloat16), w2_ref[...],
                            preferred_element_type=jnp.float32)

    # ---- dropout ----
    # nn.Dropout is identity at inference (module.eval()).
    # TODO(synk): training-mode dropout would use pltpu.prng_seed +
    #             pltpu.stateful_bernoulli with 1/(1-p) scaling.

    @pl.when(kf == pl.num_programs(1) - 1)
    def _finalize():
        # Residual add + LayerNorm over the last dim, all in f32.
        xf = x.astype(jnp.float32)                   # no-op when x is f32
        y = acc_ref[...] + b2_ref[...]               # (tm, D)
        s = xf + y
        mean = jnp.mean(s, axis=-1, keepdims=True)
        cent = s - mean
        var = jnp.mean(cent * cent, axis=-1, keepdims=True)
        normed = cent * jax.lax.rsqrt(var + LN_EPS)
        out = normed * gamma_ref[...] + beta_ref[...]
        o_ref[...] = out.astype(o_ref.dtype)


def residual_forward(x, w1, b1, w2, b2, gamma, beta, *, tm=256, ff_block=512):
    """x: (B, S, D). Returns LayerNorm(x + FFN(x)) of shape (B, S, D).

    D should be a multiple of 128 for lane-dense (unmasked) output stores.
    """
    B, S, D = x.shape
    D_w, FF = w1.shape
    assert D_w == D
    M = B * S

    # Large row tile (multiple of 8 for f32 sublanes; big tiles amortize the
    # ~0.35 us/step pipeline overhead and fill the MXU M panel). Clamp for
    # tiny inputs; pad rows so the grid divides evenly.  For v7x megacore,
    # pick tm so that Mp // tm >= 2 when M is large.
    tm_eff = max(8, (min(tm, _round_up(M, 8)) // 8) * 8)
    Mp = _round_up(M, tm_eff)

    # FF tiling (needed on v7x's 64 MiB VMEM for big FFNs); degenerates to a
    # single FF step when ff_block does not divide FF or FF is small.
    if ff_block < FF and FF % ff_block == 0:
        tf = ff_block
    else:
        tf = FF
    nf = FF // tf

    x2d = x.reshape(M, D)
    if Mp != M:
        x2d = jnp.pad(x2d, ((0, Mp - M), (0, 0)))

    # bf16 weights: half the HBM->VMEM bytes and VMEM residency; matmuls
    # accumulate in f32 via preferred_element_type.
    w1b = w1.astype(jnp.bfloat16)
    w2b = w2.astype(jnp.bfloat16)
    b1_2d = b1.reshape(1, FF).astype(jnp.float32)
    b2_2d = b2.reshape(1, D).astype(jnp.float32)
    gamma_2d = gamma.reshape(1, D).astype(jnp.float32)
    beta_2d = beta.reshape(1, D).astype(jnp.float32)

    # Operands whose block never changes across grid steps -> single buffer
    # (halves their VMEM footprint). When the FF axis is tiled, W1/W2/b1
    # blocks do change per step, so keep them double-buffered.
    const_buf = pl.Buffered(1)
    w_buf = pl.Buffered(1) if nf == 1 else pl.Buffered(2)

    grid = (Mp // tm_eff, nf)
    itemsize = jnp.dtype(x.dtype).itemsize
    cost = pl.CostEstimate(
        flops=4 * Mp * D * FF,                       # two matmuls
        transcendentals=Mp,                          # one rsqrt per row
        bytes_accessed=(Mp * D * itemsize            # x in
                        + Mp * D * itemsize          # out
                        + (w1b.size + w2b.size) * 2  # bf16 weights
                        + (b1.size + b2.size + gamma.size + beta.size) * 4),
    )

    out2d = pl.pallas_call(
        residual_ffn_kernel,
        out_shape=jax.ShapeDtypeStruct((Mp, D), x.dtype),
        grid_spec=pltpu.PrefetchScalarGridSpec(
            num_scalar_prefetch=0,
            grid=grid,
            in_specs=[
                pl.BlockSpec((tm_eff, D), lambda i, kf: (i, 0)),   # x rows
                pl.BlockSpec((D, tf), lambda i, kf: (0, kf),
                             pipeline_mode=w_buf),                 # W1 block
                pl.BlockSpec((1, tf), lambda i, kf: (0, kf),
                             pipeline_mode=w_buf),                 # b1 block
                pl.BlockSpec((tf, D), lambda i, kf: (kf, 0),
                             pipeline_mode=w_buf),                 # W2 block
                pl.BlockSpec((1, D), lambda i, kf: (0, 0),
                             pipeline_mode=const_buf),             # b2
                pl.BlockSpec((1, D), lambda i, kf: (0, 0),
                             pipeline_mode=const_buf),             # LN gamma
                pl.BlockSpec((1, D), lambda i, kf: (0, 0),
                             pipeline_mode=const_buf),             # LN beta
            ],
            out_specs=pl.BlockSpec((tm_eff, D), lambda i, kf: (i, 0)),
            scratch_shapes=[pltpu.VMEM((tm_eff, D), jnp.float32)],
        ),
        compiler_params=pltpu.CompilerParams(
            dimension_semantics=("parallel", "arbitrary"),
            vmem_limit_bytes=64 << 20),   # safe ceiling on v5e/v6e/v7x
        cost_estimate=cost,
    )(x2d, w1b, b1_2d, w2b, b2_2d, gamma_2d, beta_2d)

    return out2d[:M].reshape(B, S, D)


def reference_forward(x, w1, b1, w2, b2, gamma, beta):
    """Pure-JAX reference mirroring the kernel's bf16-matmul / f32-LN recipe."""
    xb = x.astype(jnp.bfloat16)
    w1b = w1.astype(jnp.bfloat16)
    w2b = w2.astype(jnp.bfloat16)
    h = jnp.dot(xb, w1b, preferred_element_type=jnp.float32) + b1
    h = jnp.maximum(h, 0.0)
    y = jnp.dot(h.astype(jnp.bfloat16), w2b,
                preferred_element_type=jnp.float32) + b2
    s = x.astype(jnp.float32) + y
    mean = jnp.mean(s, axis=-1, keepdims=True)
    var = jnp.mean((s - mean) ** 2, axis=-1, keepdims=True)
    return (s - mean) * jax.lax.rsqrt(var + LN_EPS) * gamma + beta


if __name__ == "__main__":
    key = jax.random.PRNGKey(0)
    # Small but lane-dense demo shapes: D multiple of 128 -> unmasked stores.
    B, S, D, FF = 2, 8, 128, 256

    kx, k1, k2, k3, k4 = jax.random.split(key, 5)
    x = jax.random.normal(kx, (B, S, D), dtype=jnp.float32)

    # Deterministic parameter init (shapes per nn.Linear / nn.LayerNorm).
    w1 = jax.random.normal(k1, (D, FF), dtype=jnp.float32) * (1.0 / jnp.sqrt(D))
    b1 = jax.random.normal(k2, (FF,), dtype=jnp.float32) * 0.01
    w2 = jax.random.normal(k3, (FF, D), dtype=jnp.float32) * (1.0 / jnp.sqrt(FF))
    b2 = jax.random.normal(k4, (D,), dtype=jnp.float32) * 0.01
    gamma = jnp.ones((D,), dtype=jnp.float32)
    beta = jnp.zeros((D,), dtype=jnp.float32)

    out = residual_forward(x, w1, b1, w2, b2, gamma, beta)
    out = jax.block_until_ready(out)

    ref = reference_forward(x, w1, b1, w2, b2, gamma, beta)
    assert out.shape == (B, S, D)
    assert jnp.allclose(out, ref, atol=2e-3, rtol=2e-3), "mismatch vs reference"

    print("KERNEL_OK")
</pallas_src>

<mosaic_0001>
module attributes {stable_mosaic.version = 11 : i64} {
  func.func @residual_ffn_kernel(%arg0: i32, %arg1: i32, %arg2: memref<16x128xf32, #tpu.memory_space<vmem>>, %arg3: memref<128x256xbf16, #tpu.memory_space<vmem>>, %arg4: memref<1x256xf32, #tpu.memory_space<vmem>>, %arg5: memref<256x128xbf16, #tpu.memory_space<vmem>>, %arg6: memref<1x128xf32, #tpu.memory_space<vmem>>, %arg7: memref<1x128xf32, #tpu.memory_space<vmem>>, %arg8: memref<1x128xf32, #tpu.memory_space<vmem>>, %arg9: memref<16x128xf32, #tpu.memory_space<vmem>>, %arg10: memref<16x128xf32, #tpu.memory_space<vmem>>) attributes {dimension_semantics = [#tpu.dimension_semantics<parallel>, #tpu.dimension_semantics<arbitrary>], iteration_bounds = array<i64: 1, 1>, scalar_prefetch = 0 : i64, scratch_operands = 1 : i64, tpu.core_type = #tpu.core_type<tc>, window_params = [{transform_indices = @transform_0, window_bounds = array<i64: 16, 128>}, {pipeline_mode = #tpu.pipeline_mode<synchronous>, transform_indices = @transform_1, window_bounds = array<i64: 128, 256>}, {pipeline_mode = #tpu.pipeline_mode<synchronous>, transform_indices = @transform_2, window_bounds = array<i64: 1, 256>}, {pipeline_mode = #tpu.pipeline_mode<synchronous>, transform_indices = @transform_3, window_bounds = array<i64: 256, 128>}, {pipeline_mode = #tpu.pipeline_mode<synchronous>, transform_indices = @transform_4, window_bounds = array<i64: 1, 128>}, {pipeline_mode = #tpu.pipeline_mode<synchronous>, transform_indices = @transform_5, window_bounds = array<i64: 1, 128>}, {pipeline_mode = #tpu.pipeline_mode<synchronous>, transform_indices = @transform_6, window_bounds = array<i64: 1, 128>}, {transform_indices = @transform_7, window_bounds = array<i64: 16, 128>}]} {
    %c0_i32 = arith.constant 0 : i32
    %0 = arith.cmpi eq, %arg1, %c0_i32 : i32
    %1 = arith.extui %0 : i1 to i32
    %c0_i32_0 = arith.constant 0 : i32
    %2 = arith.cmpi ne, %1, %c0_i32_0 : i32
    scf.if %2 {
      %cst_16 = arith.constant 0.000000e+00 : f32
      %21 = vector.broadcast %cst_16 : f32 to vector<16x128xf32>
      %c0_17 = arith.constant 0 : index
      %c0_18 = arith.constant 0 : index
      %22 = vector.load %arg10[%c0_17, %c0_18] : memref<16x128xf32, #tpu.memory_space<vmem>>, vector<16x128xf32>
      tpu.vector_store %arg10[%c0_17, %c0_18], %21 {strides = array<i32>} : memref<16x128xf32, #tpu.memory_space<vmem>>, vector<16x128xf32>,
    } else {
    }
    %c0 = arith.constant 0 : index
    %c0_1 = arith.constant 0 : index
    %3 = vector.load %arg2[%c0, %c0_1] : memref<16x128xf32, #tpu.memory_space<vmem>>, vector<16x128xf32>
    %4 = arith.truncf %3 : vector<16x128xf32> to vector<16x128xbf16>
    %c0_2 = arith.constant 0 : index
    %c0_3 = arith.constant 0 : index
    %5 = vector.load %arg3[%c0_2, %c0_3] : memref<128x256xbf16, #tpu.memory_space<vmem>>, vector<128x256xbf16>
    %cst = arith.constant dense<0.000000e+00> : vector<16x256xf32>
    %6 = tpu.matmul %4, %5, %cst {dimension_numbers = #tpu.dot_dimension_numbers<[1], [0], [0], [1], [0, 0, 1, 1], [], []>} : vector<16x128xbf16>, vector<128x256xbf16>, vector<16x256xf32> -> vector<16x256xf32>
    %c0_4 = arith.constant 0 : index
    %c0_5 = arith.constant 0 : index
    %7 = vector.load %arg4[%c0_4, %c0_5] : memref<1x256xf32, #tpu.memory_space<vmem>>, vector<1x256xf32>
    %8 = vector.broadcast %7 : vector<1x256xf32> to vector<16x256xf32>
    %9 = arith.addf %6, %8 : vector<16x256xf32>
    %cst_6 = arith.constant 0.000000e+00 : f32
    %10 = vector.broadcast %cst_6 : f32 to vector<16x256xf32>
    %11 = arith.maximumf %9, %10 : vector<16x256xf32>
    %c0_7 = arith.constant 0 : index
    %c0_8 = arith.constant 0 : index
    %12 = vector.load %arg10[%c0_7, %c0_8] : memref<16x128xf32, #tpu.memory_space<vmem>>, vector<16x128xf32>
    %13 = arith.truncf %11 : vector<16x256xf32> to vector<16x256xbf16>
    %c0_9 = arith.constant 0 : index
    %c0_10 = arith.constant 0 : index
    %14 = vector.load %arg5[%c0_9, %c0_10] : memref<256x128xbf16, #tpu.memory_space<vmem>>, vector<256x128xbf16>
    %cst_11 = arith.constant dense<0.000000e+00> : vector<16x128xf32>
    %15 = tpu.matmul %13, %14, %cst_11 {dimension_numbers = #tpu.dot_dimension_numbers<[1], [0], [0], [1], [0, 0, 1, 1], [], []>} : vector<16x256xbf16>, vector<256x128xbf16>, vector<16x128xf32> -> vector<16x128xf32>
    %16 = arith.addf %12, %15 : vector<16x128xf32>
    %c0_12 = arith.constant 0 : index
    %c0_13 = arith.constant 0 : index
    %17 = vector.load %arg10[%c0_12, %c0_13] : memref<16x128xf32, #tpu.memory_space<vmem>>, vector<16x128xf32>
    tpu.vector_store %arg10[%c0_12, %c0_13], %16 {strides = array<i32>} : memref<16x128xf32, #tpu.memory_space<vmem>>, vector<16x128xf32>,
    %c0_i32_14 = arith.constant 0 : i32
    %18 = arith.cmpi eq, %arg1, %c0_i32_14 : i32
    %19 = arith.extui %18 : i1 to i32
    %c0_i32_15 = arith.constant 0 : i32
    %20 = arith.cmpi ne, %19, %c0_i32_15 : i32
    scf.if %20 {
      %c0_16 = arith.constant 0 : index
      %c0_17 = arith.constant 0 : index
      %21 = vector.load %arg10[%c0_16, %c0_17] : memref<16x128xf32, #tpu.memory_space<vmem>>, vector<16x128xf32>
      %c0_18 = arith.constant 0 : index
      %c0_19 = arith.constant 0 : index
      %22 = vector.load %arg6[%c0_18, %c0_19] : memref<1x128xf32, #tpu.memory_space<vmem>>, vector<1x128xf32>
      %23 = vector.broadcast %22 : vector<1x128xf32> to vector<16x128xf32>
      %24 = arith.addf %21, %23 : vector<16x128xf32>
      %25 = arith.addf %3, %24 : vector<16x128xf32>
      %cst_20 = arith.constant dense<0.000000e+00> : vector<16xf32>
      %26 = vector.multi_reduction <add>, %25, %cst_20 [1] : vector<16x128xf32> to vector<16xf32>
      %27 = vector.shape_cast %26 : vector<16xf32> to vector<16x1xf32>
      %cst_21 = arith.constant 1.280000e+02 : f32
      %28 = vector.broadcast %cst_21 : f32 to vector<16x1xf32>
      %29 = arith.divf %27, %28 : vector<16x1xf32>
      %30 = vector.broadcast %29 : vector<16x1xf32> to vector<16x128xf32>
      %31 = arith.subf %25, %30 : vector<16x128xf32>
      %32 = arith.mulf %31, %31 : vector<16x128xf32>
      %cst_22 = arith.constant dense<0.000000e+00> : vector<16xf32>
      %33 = vector.multi_reduction <add>, %32, %cst_22 [1] : vector<16x128xf32> to vector<16xf32>
      %34 = vector.shape_cast %33 : vector<16xf32> to vector<16x1xf32>
      %cst_23 = arith.constant 1.280000e+02 : f32
      %35 = vector.broadcast %cst_23 : f32 to vector<16x1xf32>
      %36 = arith.divf %34, %35 : vector<16x1xf32>
      %cst_24 = arith.constant 9.99999974E-6 : f32
      %37 = vector.broadcast %cst_24 : f32 to vector<16x1xf32>
      %38 = arith.addf %36, %37 : vector<16x1xf32>
      %39 = math.rsqrt %38 : vector<16x1xf32>
      %40 = vector.broadcast %39 : vector<16x1xf32> to vector<16x128xf32>
      %41 = arith.mulf %31, %40 : vector<16x128xf32>
      %c0_25 = arith.constant 0 : index
      %c0_26 = arith.constant 0 : index
      %42 = vector.load %arg7[%c0_25, %c0_26] : memref<1x128xf32, #tpu.memory_space<vmem>>, vector<1x128xf32>
      %43 = vector.broadcast %42 : vector<1x128xf32> to vector<16x128xf32>
      %44 = arith.mulf %41, %43 : vector<16x128xf32>
      %c0_27 = arith.constant 0 : index
      %c0_28 = arith.constant 0 : index
      %45 = vector.load %arg8[%c0_27, %c0_28] : memref<1x128xf32, #tpu.memory_space<vmem>>, vector<1x128xf32>
      %46 = vector.broadcast %45 : vector<1x128xf32> to vector<16x128xf32>
      %47 = arith.addf %44, %46 : vector<16x128xf32>
      %c0_29 = arith.constant 0 : index
      %c0_30 = arith.constant 0 : index
      %48 = vector.load %arg9[%c0_29, %c0_30] : memref<16x128xf32, #tpu.memory_space<vmem>>, vector<16x128xf32>
      tpu.vector_store %arg9[%c0_29, %c0_30], %47 {strides = array<i32>} : memref<16x128xf32, #tpu.memory_space<vmem>>, vector<16x128xf32>,
    } else {
    }
    return
  }
  func.func @transform_0(%arg0: i32, %arg1: i32) -> (i32, i32) {
    %c0_i32 = arith.constant 0 : i32
    %c0_i32_0 = arith.constant 0 : i32
    return %arg0, %c0_i32 : i32, i32
  }
  func.func @transform_1(%arg0: i32, %arg1: i32) -> (i32, i32) {
    %c0_i32 = arith.constant 0 : i32
    %c0_i32_0 = arith.constant 0 : i32
    return %c0_i32, %arg1 : i32, i32
  }
  func.func @transform_2(%arg0: i32, %arg1: i32) -> (i32, i32) {
    %c0_i32 = arith.constant 0 : i32
    %c0_i32_0 = arith.constant 0 : i32
    return %c0_i32, %arg1 : i32, i32
  }
  func.func @transform_3(%arg0: i32, %arg1: i32) -> (i32, i32) {
    %c0_i32 = arith.constant 0 : i32
    %c0_i32_0 = arith.constant 0 : i32
    return %arg1, %c0_i32 : i32, i32
  }
  func.func @transform_4(%arg0: i32, %arg1: i32) -> (i32, i32) {
    %c0_i32 = arith.constant 0 : i32
    %c0_i32_0 = arith.constant 0 : i32
    %c0_i32_1 = arith.constant 0 : i32
    return %c0_i32, %c0_i32_0 : i32, i32
  }
  func.func @transform_5(%arg0: i32, %arg1: i32) -> (i32, i32) {
    %c0_i32 = arith.constant 0 : i32
    %c0_i32_0 = arith.constant 0 : i32
    %c0_i32_1 = arith.constant 0 : i32
    return %c0_i32, %c0_i32_0 : i32, i32
  }
  func.func @transform_6(%arg0: i32, %arg1: i32) -> (i32, i32) {
    %c0_i32 = arith.constant 0 : i32
    %c0_i32_0 = arith.constant 0 : i32
    %c0_i32_1 = arith.constant 0 : i32
    return %c0_i32, %c0_i32_0 : i32, i32
  }
  func.func @transform_7(%arg0: i32, %arg1: i32) -> (i32, i32) {
    %c0_i32 = arith.constant 0 : i32
    %c0_i32_0 = arith.constant 0 : i32
    return %arg0, %c0_i32 : i32, i32
  }
}

</mosaic_0001>

<bundles_post_ra>
// kernel: tpu_custom_call.1
= control target key start
LH: loop header
LB: loop body
LE: loop exit
PB: predicated region body
PF: predicated region fallthrough
CT: control target
= control target key end

     0   :  { %12 = vsyncpa [#allocation4], 0  ;;  %s880_s0 = inlined_call_operand.hbm [shape: f32[16,128], index: 0, kind: input, shape index: {}]   ;;  %s881_s1 = inlined_call_operand.hbm [shape: bf16[128,256], index: 1, kind: input, shape index: {}]   ;;  %s882_s2 = inlined_call_operand.hbm [shape: f32[1,256], index: 2, kind: input, shape index: {}]   ;;  %s883_s3 = inlined_call_operand.hbm [shape: bf16[256,128], index: 3, kind: input, shape index: {}]   ;;  %s884_s4 = inlined_call_operand.vmem [shape: f32[1,128], index: 4, kind: input, shape index: {}]   ;;  %s885_s5 = inlined_call_operand.vmem [shape: f32[1,128], index: 5, kind: input, shape index: {}]   ;;  %s886_s6 = inlined_call_operand.vmem [shape: f32[1,128], index: 6, kind: input, shape index: {}]   ;;  %s887_s7 = inlined_call_operand.hbm [shape: f32[16,128], index: 7, kind: output, shape index: {}]  }
   0x1   :  { %13 = vsyncpa [#allocation7], 0 }
   0x2   :  { %14 = vsyncpa [#allocation10], 0 }
   0x3   :  { %15 = vsyncpa [#allocation5], 0  ;;  %s33_s26 = sshll.u32 %s881_s1, 4  ;;  %s797_s27 = smov [#allocation6]   ;;  %s34_s26 = int_to_ptr.hbm [resolvable:$true] %s33_s26 }
   0x4   :  { %s35_s28 = sshll.u32 %s797_s27, 4  ;;  %s20_s8 = sshll.u32 %s880_s0, 4  ;;  %s36_s28 = int_to_ptr.vmem [resolvable:$true] %s35_s28  ;;  %s21_s8 = int_to_ptr.hbm [resolvable:$true] %s20_s8 }
   0x5   :  { %s798_s9 = smov 128   ;;  %s799_s10 = smov 8  }
   0x6   :  { %41 = dma.hbm_to_vmem [thread:$0]  %s34_s26, 2048, %s36_s28, [#allocation7], %s798_s9, %s798_s9, %s799_s10  }
   0x7   :  { %s800_s11 = smov [#allocation3]   ;;  %s47_s1 = sshll.u32 %s882_s2, 4  ;;  %s48_s1 = int_to_ptr.hbm [resolvable:$true] %s47_s1 }
   0x8   :  { %s22_s12 = sshll.u32 %s800_s11, 4  ;;  %s57_s16 = sshll.u32 %s883_s3, 4  ;;  %s23_s12 = int_to_ptr.vmem [resolvable:$true] %s22_s12  ;;  %s58_s16 = int_to_ptr.hbm [resolvable:$true] %s57_s16 }
   0x9   :  { %28 = dma.hbm_to_vmem [thread:$0]  %s21_s8, 256, %s23_s12, [#allocation4], %s798_s9, %s798_s9, %s799_s10  }
   0xa   :  { %s801_s17 = smov [#allocation8]   ;;  %s802_s19 = smov [#allocation9]  }
   0xb   :  { %s49_s18 = sshll.u32 %s801_s17, 4  ;;  %s59_s20 = sshll.u32 %s802_s19, 4  ;;  %s50_s18 = int_to_ptr.vmem [resolvable:$true] %s49_s18  ;;  %s60_s20 = int_to_ptr.vmem [resolvable:$true] %s59_s20 }
   0xc   :  { %52 = dma.hbm_to_vmem [thread:$0]  %s48_s1, 32, %s50_s18, [#allocation7]  }
   0xd   :  { %s803_s21 = smov 64   ;;  %s804_s2 = smov 4  }
   0xe   :  { %65 = dma.hbm_to_vmem [thread:$0]  %s58_s16, 2048, %s60_s20, [#allocation10], %s803_s21, %s803_s21, %s804_s2  }
   0xf   :  { %789 = dma.done.wait [#allocation4], 256  }
  0x10   :  { %790 = vsyncadd [#allocation4], 4294967040 }
  0x11   :  { %791 = dma.done.wait [#allocation7], 2080  }
  0x12   :  { %792 = vsyncadd [#allocation7], 4294965216 }
  0x13   :  { %793 = dma.done.wait [#allocation10], 2048  }
  0x14   :  { %794 = vsyncadd [#allocation10], 4294965248  ;;  %v548_v0 = vld [vmem:[#allocation6 + $0x70] sm:$0xf]  ;;  %v633_v1 = vld [vmem:[#allocation6 + $0x74] sm:$0xf0] }
  0x15   :  { %v632_v2 = vld [vmem:[#allocation6 + $0x74] sm:$0xf]  ;;  %v549_v3 = vor.u32 %v633_v1, %v548_v0  ;;  %v550_v4 = vld [vmem:[#allocation6 + $0x78] sm:$0xf0]  ;;  %v540_v5 = vld [vmem:[#allocation6 + $0x60] sm:$0xf] }
  0x16   :  { %v631_v6 = vld [vmem:[#allocation6 + $0x64] sm:$0xf0]  ;;  %v553_v7 = vor.u32 %v632_v2, %v550_v4  ;;  %v630_v8 = vld [vmem:[#allocation6 + $0x64] sm:$0xf]  ;;  %v542_v9 = vld [vmem:[#allocation6 + $0x68] sm:$0xf0] }
  0x17   :  { %199 = vmatpush.bf16.msra.mxu0 %v549_v3  ;;  %v541_v10 = vor.u32 %v631_v6, %v540_v5  ;;  %v545_v11 = vor.u32 %v630_v8, %v542_v9  ;;  %v532_v12 = vld [vmem:[#allocation6 + $0x50] sm:$0xf]  ;;  %v629_v13 = vld [vmem:[#allocation6 + $0x54] sm:$0xf0]  ;;  %v628_v14 = vld [vmem:[#allocation6 + $0x54] sm:$0xf] }
  0x18   :  { %213 = vmatpush.bf16.msra.mxu1 %v553_v7  ;;  %v534_v15 = vld [vmem:[#allocation6 + $0x58] sm:$0xf0]  ;;  %v533_v16 = vor.u32 %v629_v13, %v532_v12  ;;  %v524_v18 = vld [vmem:[#allocation6 + $0x40] sm:$0xf]  ;;  %v627_v19 = vld [vmem:[#allocation6 + $0x44] sm:$0xf0] }
  0x19   :  { %v537_v17 = vor.u32 %v628_v14, %v534_v15  ;;  %v626_v20 = vld [vmem:[#allocation6 + $0x44] sm:$0xf]  ;;  %v526_v21 = vld [vmem:[#allocation6 + $0x48] sm:$0xf0]  ;;  %v525_v22 = vor.u32 %v627_v19, %v524_v18  ;;  %v641_v23 = vld [vmem:[#allocation9 + $0x38] sm:$0xff]  ;;  %s806_s26 = smov [#allocation11]  }
  0x1a   :  { %v649_v24 = vld [vmem:[#allocation9 + $0x78] sm:$0xff]  ;;  %v529_v25 = vor.u32 %v626_v20, %v526_v21  ;;  %v516_v26 = vld [vmem:[#allocation6 + $0x30] sm:$0xf]  ;;  %v624_v28 = vld [vmem:[#allocation6 + $0x34] sm:$0xf]  ;;  %363 = vmatpush.bf16.msra.mxu2 %v641_v23  ;;  %s475_s29 = sshll.u32 %s887_s7, 4  ;;  %s476_s29 = int_to_ptr.hbm [resolvable:$true] %s475_s29 }
  0x1b   :  { %200 = vmatpush.bf16.msra.mxu0 %v541_v10  ;;  %v625_v27 = vld [vmem:[#allocation6 + $0x34] sm:$0xf0]  ;;  %v518_v29 = vld [vmem:[#allocation6 + $0x38] sm:$0xf0]  ;;  %377 = vmatpush.bf16.msra.mxu3 %v649_v24  ;;  %v508_v34 = vld [vmem:[#allocation6 + $0x20] sm:$0xf] }
  0x1c   :  { %214 = vmatpush.bf16.msra.mxu1 %v545_v11  ;;  %v640_v30 = vld [vmem:[#allocation9 + $0x30] sm:$0xff]  ;;  %v517_v32 = vor.u32 %v625_v27, %v516_v26  ;;  %v521_v33 = vor.u32 %v624_v28, %v518_v29  ;;  %v623_v35 = vld [vmem:[#allocation6 + $0x24] sm:$0xf0]  ;;  %v622_v36 = vld [vmem:[#allocation6 + $0x24] sm:$0xf] }
  0x1d   :  { %v648_v31 = vld [vmem:[#allocation9 + $0x70] sm:$0xff]  ;;  %v510_v37 = vld [vmem:[#allocation6 + $0x28] sm:$0xf0]  ;;  %v509_v40 = vor.u32 %v623_v35, %v508_v34  ;;  %v502_v45 = vld [vmem:[#allocation6 + $0x18] sm:$0xf0] }
  0x1e   :  { %364 = vmatpush.bf16.msra.mxu2 %v640_v30  ;;  %v639_v38 = vld [vmem:[#allocation9 + $0x28] sm:$0xff]  ;;  %v513_v41 = vor.u32 %v622_v36, %v510_v37  ;;  %v621_v43 = vld [vmem:[#allocation6 + $0x14] sm:$0xf0]  ;;  %v620_v44 = vld [vmem:[#allocation6 + $0x14] sm:$0xf] }
  0x1f   :  { %201 = vmatpush.bf16.msra.mxu0 %v533_v16  ;;  %378 = vmatpush.bf16.msra.mxu3 %v648_v31  ;;  %v647_v39 = vld [vmem:[#allocation9 + $0x68] sm:$0xff]  ;;  %v638_v46 = vld [vmem:[#allocation9 + $0x20] sm:$0xff]  ;;  %v505_v49 = vor.u32 %v620_v44, %v502_v45  ;;  %v95_v56 = vld [vmem:[#allocation3 + $0x8] sm:$0xff]  ;;  %v805_v31 = vmov 128.0  }
  0x20   :  { %215 = vmatpush.bf16.msra.mxu1 %v537_v17  ;;  %v500_v42 = vld [vmem:[#allocation6 + $0x10] sm:$0xf]  ;;  %v646_v47 = vld [vmem:[#allocation9 + $0x60] sm:$0xff]  ;;  %v494_v53 = vld [vmem:[#allocation6 + $0x8] sm:$0xf0]  ;;  %663 = vrcp.f32 %v805_v31 }
  0x21   :  { %v501_v48 = vor.u32 %v621_v43, %v500_v42  ;;  %v492_v50 = vld [vmem:[#allocation6] sm:$0xf]  ;;  %v619_v51 = vld [vmem:[#allocation6 + $0x4] sm:$0xf0]  ;;  %v618_v52 = vld [vmem:[#allocation6 + $0x4] sm:$0xf] }
  0x22   :  { %365 = vmatpush.bf16.msra.mxu2 %v639_v38  ;;  %v493_v54 = vor.u32 %v619_v51, %v492_v50  ;;  %v94_v55 = vld [vmem:[#allocation3] sm:$0xff]  ;;  %v497_v57 = vor.u32 %v618_v52, %v494_v53  ;;  %v637_v59 = vld [vmem:[#allocation9 + $0x18] sm:$0xff]  ;;  %v634_v1 = vld [vmem:[#allocation9] sm:$0xff] }
  0x23   :  { %202 = vmatpush.bf16.msra.mxu0 %v525_v22  ;;  %379 = vmatpush.bf16.msra.mxu3 %v647_v39  ;;  %v96_v58 = vpack.c.bf16 %v95_v56, %v94_v55  ;;  %v645_v60 = vld [vmem:[#allocation9 + $0x58] sm:$0xff]  ;;  %v636_v61 = vld [vmem:[#allocation9 + $0x10] sm:$0xff]  ;;  %v635_v63 = vld [vmem:[#allocation9 + $0x8] sm:$0xff] }
  0x24   :  { %216 = vmatpush.bf16.msra.mxu1 %v529_v25  ;;  %v644_v62 = vld [vmem:[#allocation9 + $0x50] sm:$0xff]  ;;  %v643_v0 = vld [vmem:[#allocation9 + $0x48] sm:$0xff]  ;;  %v642_v2 = vld [vmem:[#allocation9 + $0x40] sm:$0xff] }
  0x25   :  { %v113_v3 = vld [vmem:[#allocation8] sm:$0x3]  ;;  %v660_v21 = vld [vmem:[%s884_s4] ss:$0 sm:$0xff] }
  0x26   :  { %366 = vmatpush.bf16.msra.mxu2 %v638_v46  ;;  %v115_v6 = vperm.slane %v113_v3, 0  ;;  %v116_v7 = vperm.slane %v113_v3, 1 }
  0x27   :  { %203 = vmatpush.bf16.msra.mxu0 %v517_v32  ;;  %380 = vmatpush.bf16.msra.mxu3 %v646_v47  ;;  %v664_v32 = vpop.eup %663 }
  0x28   :  { %217 = vmatpush.bf16.msra.mxu1 %v521_v33  ;;  %v413_v33 = vmul.f32 128.0, %v664_v32  ;;  %vm417_vm0 = vweird.f32 %v664_v32 }
  0x2a   :  { %367 = vmatpush.bf16.msra.mxu2 %v637_v59  ;;  %v414_v34 = vsub.f32 1.0, %v413_v33 }
  0x2b   :  { %204 = vmatpush.bf16.msra.mxu0 %v509_v40  ;;  %381 = vmatpush.bf16.msra.mxu3 %v645_v60  ;;  %v661_v60 = vld [vmem:[%s885_s5] ss:$0 sm:$0xff]  ;;  %s473_s5 = sshll.u32 %s806_s26, 4  ;;  %s474_s5 = int_to_ptr.vmem [resolvable:$true] %s473_s5 }
  0x2c   :  { %218 = vmatpush.bf16.msra.mxu1 %v513_v41  ;;  %v415_v35 = vmul.f32 %v664_v32, %v414_v34 }
  0x2e   :  { %368 = vmatpush.bf16.msra.mxu2 %v636_v61  ;;  %v416_v36 = vadd.f32 %v664_v32, %v415_v35 }
  0x2f   :  { %205 = vmatpush.bf16.msra.mxu0 %v501_v48  ;;  %382 = vmatpush.bf16.msra.mxu3 %v644_v62 }
  0x30   :  { %219 = vmatpush.bf16.msra.mxu1 %v505_v49  ;;  %v418_v37 = vsel %vm417_vm0, %v664_v32, %v416_v36 }
  0x32   :  { %369 = vmatpush.bf16.msra.mxu2 %v635_v63 }
  0x33   :  { %206 = vmatpush.bf16.msra.mxu0 %v493_v54  ;;  %383 = vmatpush.bf16.msra.mxu3 %v643_v0  ;;  %v662_v0 = vld [vmem:[%s886_s6] ss:$0 sm:$0xff] }
  0x34   :  { %220 = vmatpush.bf16.msra.mxu1 %v497_v57 }
  0x36   :  { %207 = vmatmul.bf16.vlgmr.msra.gmra.mxu0 %v96_v58  ;;  %370 = vmatpush.bf16.msra.mxu2 %v634_v1 }
  0x37   :  { %221 = vmatmul.bf16.vlgmr.msra.gmra.mxu1 %v96_v58  ;;  %384 = vmatpush.bf16.msra.mxu3 %v642_v2 }
  0xb3   :  { %v208_v4 = vpop.f32.mrf.mxu0 }
  0xb4   :  { %v222_v5 = vpop.f32.mrf.mxu1  ;;  %v209_v8 = vadd.f32 %v208_v4, %v115_v6 }
  0xb5   :  { %v223_v9 = vadd.f32 %v222_v5, %v116_v7 }
  0xb6   :  { %v227_v14 = vmax.f32 %v209_v8, 0.0 }
  0xb7   :  { %v228_v16 = vmax.f32 %v223_v9, 0.0 }
  0xbb   :  { %v210_v10 = vpop.f32.mrf.mxu0 }
  0xbc   :  { %v211_v11 = vadd.f32 %v210_v10, %v115_v6  ;;  %v224_v12 = vpop.f32.mrf.mxu1 }
  0xbd   :  { %v225_v13 = vadd.f32 %v224_v12, %v116_v7 }
  0xbe   :  { %v229_v15 = vmax.f32 %v211_v11, 0.0 }
  0xbf   :  { %v230_v17 = vmax.f32 %v225_v13, 0.0 }
  0xc0   :  { %v233_v18 = vpack.c.bf16 %v229_v15, %v227_v14 }
  0xc1   :  { %v234_v19 = vpack.c.bf16 %v230_v17, %v228_v16 }
  0xc2   :  { %371 = vmatmul.bf16.vlgmr.msra.gmra.mxu2 %v233_v18 }
  0xc3   :  { %385 = vmatmul.bf16.vlgmr.msra.gmra.mxu3 %v234_v19 }
 0x145   :  { %v372_v20 = vpop.f32.mrf.mxu2 }
 0x146   :  { %v386_v22 = vpop.f32.mrf.mxu3 }
 0x147   :  { %v387_v23 = vadd.f32 %v386_v22, %v372_v20 }
 0x149   :  { %v404_v24 = vadd.f32 %v660_v21, %v387_v23 }
 0x14b   :  { %v406_v25 = vadd.f32 %v404_v24, %v94_v55 }
 0x14d   :  { %408 = vadd.xlane.f32.xlu0 %v406_v25  ;;  %v374_v26 = vpop.f32.mrf.mxu2 }
 0x14e   :  { %v388_v27 = vpop.f32.mrf.mxu3 }
 0x14f   :  { %v389_v28 = vadd.f32 %v388_v27, %v374_v26 }
 0x151   :  { %v405_v29 = vadd.f32 %v660_v21, %v389_v28 }
 0x153   :  { %v407_v30 = vadd.f32 %v405_v29, %v95_v56 }
 0x155   :  { %410 = vadd.xlane.f32.xlu0 %v407_v30 }
 0x1c0   :  { %v409_v38 = vpop.xlane.xlu0 %408 }
 0x1c1   :  { %v419_v39 = vmul.f32 %v418_v37, %v409_v38 }
 0x1c3   :  { %v421_v40 = vsub.f32 %v406_v25, %v419_v39 }
 0x1c5   :  { %v423_v41 = vmul.f32 %v421_v40, %v421_v40 }
 0x1c7   :  { %425 = vadd.xlane.f32.xlu1 %v423_v41 }
 0x1c8   :  { %v411_v42 = vpop.xlane.xlu0 %410 }
 0x1c9   :  { %v420_v43 = vmul.f32 %v418_v37, %v411_v42 }
 0x1cb   :  { %v422_v44 = vsub.f32 %v407_v30, %v420_v43 }
 0x1cd   :  { %v424_v45 = vmul.f32 %v422_v44, %v422_v44 }
 0x1cf   :  { %427 = vadd.xlane.f32.xlu1 %v424_v45 }
 0x23a   :  { %v426_v46 = vpop.xlane.xlu1 %425 }
 0x23b   :  { %v429_v47 = vmul.f32 %v426_v46, %v418_v37 }
 0x23d   :  { %v431_v48 = vadd.f32 1e-05, %v429_v47 }
 0x23f   :  { %665 = vrsqrt.f32 %v431_v48  ;;  %vm439_vm2 = vweird.f32 %v431_v48 }
 0x242   :  { %v428_v49 = vpop.xlane.xlu1 %427 }
 0x243   :  { %v430_v50 = vmul.f32 %v428_v49, %v418_v37 }
 0x245   :  { %v666_v51 = vpop.eup %665  ;;  %v432_v52 = vadd.f32 1e-05, %v430_v50 }
 0x246   :  { %v434_v53 = vmul.f32 %v666_v51, %v431_v48  ;;  %vm440_vm1 = vweird.f32 %v666_v51 }
 0x247   :  { %667 = vrsqrt.f32 %v432_v52  ;;  %vm441_vm3 = vmor %vm439_vm2, %vm440_vm1  ;;  %vm449_vm5 = vweird.f32 %v432_v52 }
 0x248   :  { %v435_v54 = vmul.f32 %v666_v51, %v434_v53 }
 0x24a   :  { %v436_v55 = vmul.f32 0.5, %v435_v54 }
 0x24c   :  { %v437_v56 = vsub.f32 1.5, %v436_v55 }
 0x24d   :  { %v668_v57 = vpop.eup %667 }
 0x24e   :  { %v438_v58 = vmul.f32 %v666_v51, %v437_v56  ;;  %v444_v59 = vmul.f32 %v668_v57, %v432_v52  ;;  %vm450_vm4 = vweird.f32 %v668_v57 }
 0x24f   :  { %vm451_vm6 = vmor %vm449_vm5, %vm450_vm4 }
 0x250   :  { %v442_v61 = vsel %vm441_vm3, %v666_v51, %v438_v58  ;;  %v445_v62 = vmul.f32 %v668_v57, %v444_v59 }
 0x251   :  { %v453_v63 = vmul.f32 %v442_v61, %v421_v40 }
 0x252   :  { %v446_v1 = vmul.f32 0.5, %v445_v62 }
 0x253   :  { %v459_v2 = vmul.f32 %v661_v60, %v453_v63 }
 0x254   :  { %v447_v3 = vsub.f32 1.5, %v446_v1 }
 0x255   :  { %v465_v4 = vadd.f32 %v662_v0, %v459_v2 }
 0x256   :  { %v448_v5 = vmul.f32 %v668_v57, %v447_v3 }
 0x257   :  { %467 = vst [vmem:[#allocation11] sm:$0xff] %v465_v4 }
 0x258   :  { %v452_v6 = vsel %vm451_vm6, %v668_v57, %v448_v5 }
 0x259   :  { %v454_v7 = vmul.f32 %v452_v6, %v422_v44 }
 0x25b   :  { %v460_v8 = vmul.f32 %v661_v60, %v454_v7 }
 0x25d   :  { %v466_v9 = vadd.f32 %v662_v0, %v460_v8 }
 0x25f   :  { %468 = vst [vmem:[#allocation11 + $0x8] sm:$0xff] %v466_v9 }
 0x260   :  { %481 = dma.vmem_to_hbm [thread:$0]  %s474_s5, 256, %s476_s29, [#allocation5], %s798_s9, %s798_s9, %s799_s10  }
 0x261   :  { %795 = dma.done.wait [#allocation5], 256  }
 0x262   :  { %796 = vsyncadd [#allocation5], 4294967040 }
 0x263   :  { %486 = vsyncpa [#allocation4], 1 }
 0x264   :  { %487 = vsyncpa [#allocation7], 1 }
 0x265   :  { %488 = vsyncpa [#allocation10], 1 }
 0x266   :  { %489 = vsyncpa [#allocation5], 1 }

</bundles_post_ra>
